<compile_context>
chip_gen: v7x
topology: tpu7x:2x2x1
jax: 0.10.0
libtpu: 0.0.40
codegen_flags: <defaults>
</compile_context>

<pallas_src>
import jax
import jax.numpy as jnp
from jax.experimental import pallas as pl
from jax.experimental.pallas import tpu as pltpu

_LANES = 128
_SUBLANE_PACK = {4: 8, 2: 16, 1: 32}  # itemsize -> sublane packing
_MIB = 1024 * 1024


def _relu_kernel(x_ref, o_ref):
    # Single vmax per vreg (cheaper than where(): no cmp/select/zero-splat).
    o_ref[...] = jnp.maximum(x_ref[...], 0)


def _vmem_capacity_bytes() -> int:
    try:
        return int(pltpu.get_tpu_info().vmem_capacity_bytes)
    except Exception:
        return 64 * _MIB  # conservative (v7x-sized) fallback


def _pick_cols(n: int):
    """Widest lane-dense column count that divides n exactly (pure reshape)."""
    for c in (1024, 512, 256, 128):
        if n % c == 0:
            return c
    return None


def _relu_slab(x2: jax.Array) -> jax.Array:
    """ReLU over a lane-dense (rows, cols) slab; cols is a multiple of 128."""
    rows, cols = x2.shape
    dtype = x2.dtype
    itemsize = jnp.dtype(dtype).itemsize
    pack = _SUBLANE_PACK.get(itemsize, 8)

    # Generation-aware block size: big tiles amortize the ~0.35us/step grid
    # overhead; capped on v7x (64 MiB physical VMEM) so double-buffering of
    # in + out still fits with headroom.
    vmem_cap = _vmem_capacity_bytes()
    block_bytes = 8 * _MIB if vmem_cap >= 100 * _MIB else 6 * _MIB

    # Row tile: ~block_bytes per block, aligned to the dtype's sublane pack.
    tm = max(pack, (block_bytes // (cols * itemsize)) // pack * pack)

    # Keep a multi-block grid (>= ~4 blocks) whenever rows allow so the
    # "parallel" axis can be sharded across both TensorCores on v7x.
    split_tm = (rows // 4) // pack * pack
    if split_tm >= pack:
        tm = min(tm, split_tm)

    tm = min(tm, rows)  # full-row-extent block is legal when rows < tm

    grid = (pl.cdiv(rows, tm),)  # ragged last block is masked automatically

    n_elems = rows * cols
    vmem_limit = int(min(4 * block_bytes + 8 * _MIB, (vmem_cap * 3) // 4))

    return pl.pallas_call(
        _relu_kernel,
        out_shape=jax.ShapeDtypeStruct((rows, cols), dtype),
        grid_spec=pltpu.PrefetchScalarGridSpec(
            num_scalar_prefetch=0,
            grid=grid,
            in_specs=[pl.BlockSpec((tm, cols), lambda i: (i, 0))],
            out_specs=pl.BlockSpec((tm, cols), lambda i: (i, 0)),
        ),
        compiler_params=pltpu.CompilerParams(
            dimension_semantics=("parallel",),
            vmem_limit_bytes=vmem_limit,
        ),
        cost_estimate=pl.CostEstimate(
            flops=n_elems,
            transcendentals=0,
            bytes_accessed=2 * n_elems * itemsize,
        ),
    )(x2)


def relu_pallas(x: jax.Array) -> jax.Array:
    """Elementwise ReLU (out = max(x, 0)) via a lane-dense tiled Pallas kernel."""
    orig_shape = x.shape
    n = x.size
    if n == 0:
        return x

    flat = x.reshape(-1)

    cols = _pick_cols(n)
    if cols is not None:
        return _relu_slab(flat.reshape(n // cols, cols)).reshape(orig_shape)

    # Rare fallback (numel % 128 != 0): kernel on the 128-aligned prefix,
    # plain vmax on the < 128-element tail. Avoids a pad + slice round trip.
    rem = n % _LANES
    n_main = n - rem
    tail = jnp.maximum(flat[n_main:], 0)
    if n_main == 0:
        return tail.reshape(orig_shape)
    cols = _pick_cols(n_main)
    head = _relu_slab(flat[:n_main].reshape(n_main // cols, cols)).reshape(-1)
    return jnp.concatenate([head, tail]).reshape(orig_shape)


# TODO(synk): only the forward pass is implemented; the module's backward()
# (grad masking by input sign) is out of scope for this kernel.


if __name__ == "__main__":
    key = jax.random.PRNGKey(0)
    # Small NCHW-like activation tensor (narrow spatial last dim on purpose —
    # the lane-dense repack handles it without masked stores).
    x = jax.random.normal(key, (2, 4, 16, 16), dtype=jnp.float32)
    y = jax.block_until_ready(relu_pallas(x))
    ref = jnp.maximum(x, 0.0)
    assert y.shape == x.shape and y.dtype == x.dtype
    assert jnp.allclose(y, ref), "Pallas ReLU mismatch vs reference"

    # Shape whose numel is a multiple of 128 but not 1024 (ragged row blocks).
    x2 = jax.random.normal(jax.random.PRNGKey(1), (3, 5, 128), dtype=jnp.float32)
    y2 = jax.block_until_ready(relu_pallas(x2))
    assert jnp.allclose(y2, jnp.maximum(x2, 0.0)), "Pallas ReLU mismatch (ragged)"

    # Shape whose numel is NOT a multiple of 128 (prefix + tail fallback path).
    x3 = jax.random.normal(jax.random.PRNGKey(2), (7, 37), dtype=jnp.float32)
    y3 = jax.block_until_ready(relu_pallas(x3))
    assert jnp.allclose(y3, jnp.maximum(x3, 0.0)), "Pallas ReLU mismatch (tail)"

    print("KERNEL_OK")
</pallas_src>

<mosaic_0001>
module attributes {stable_mosaic.version = 11 : i64} {
  func.func @_relu_kernel(%arg0: i32, %arg1: memref<2x1024xf32, #tpu.memory_space<vmem>>, %arg2: memref<2x1024xf32, #tpu.memory_space<vmem>>) attributes {dimension_semantics = [#tpu.dimension_semantics<parallel>], iteration_bounds = array<i64: 1>, scalar_prefetch = 0 : i64, scratch_operands = 0 : i64, tpu.core_type = #tpu.core_type<tc>, window_params = [{transform_indices = @transform_0, window_bounds = array<i64: 2, 1024>}, {transform_indices = @transform_1, window_bounds = array<i64: 2, 1024>}]} {
    %c0 = arith.constant 0 : index
    %c0_0 = arith.constant 0 : index
    %0 = vector.load %arg1[%c0, %c0_0] : memref<2x1024xf32, #tpu.memory_space<vmem>>, vector<2x1024xf32>
    %cst = arith.constant 0.000000e+00 : f32
    %1 = vector.broadcast %cst : f32 to vector<2x1024xf32>
    %2 = arith.maximumf %0, %1 : vector<2x1024xf32>
    %c0_1 = arith.constant 0 : index
    %c0_2 = arith.constant 0 : index
    %3 = vector.load %arg2[%c0_1, %c0_2] : memref<2x1024xf32, #tpu.memory_space<vmem>>, vector<2x1024xf32>
    tpu.vector_store %arg2[%c0_1, %c0_2], %2 {strides = array<i32>} : memref<2x1024xf32, #tpu.memory_space<vmem>>, vector<2x1024xf32>,
    return
  }
  func.func @transform_0(%arg0: i32) -> (i32, i32) {
    %c0_i32 = arith.constant 0 : i32
    %c0_i32_0 = arith.constant 0 : i32
    return %arg0, %c0_i32 : i32, i32
  }
  func.func @transform_1(%arg0: i32) -> (i32, i32) {
    %c0_i32 = arith.constant 0 : i32
    %c0_i32_0 = arith.constant 0 : i32
    return %arg0, %c0_i32 : i32, i32
  }
}

</mosaic_0001>

<bundles_post_ra>
// kernel: tpu_custom_call.1
= control target key start
LH: loop header
LB: loop body
LE: loop exit
PB: predicated region body
PF: predicated region fallthrough
CT: control target
= control target key end

     0   :  { %6 = vsyncpa [#allocation3], 0  ;;  %s128_s0 = inlined_call_operand.hbm [shape: f32[2,1024], index: 0, kind: input, shape index: {}]   ;;  %s129_s1 = inlined_call_operand.hbm [shape: f32[2,1024], index: 1, kind: output, shape index: {}]  }
   0x1   :  { %7 = vsyncpa [#allocation4], 0  ;;  %s92_s6 = smov [#allocation2]   ;;  %s44_s10 = scalar_lea.hbm %s128_s0, 256 }
   0x2   :  { %s14_s7 = sshll.u32 %s92_s6, 4  ;;  %p45_p0 = scmp.ne.s32.totalorder %s128_s0, %s44_s10  ;;  %s15_s7 = int_to_ptr.vmem [resolvable:$true] %s14_s7 }
   0x3   :  { %p48_p1 = scmp.lt.u32.totalorder %s44_s10, %s128_s0 }
   0x5   :  { %p50_p2 = pnand %p48_p1, %p45_p0 }
   0x7   :  { %53 = shalt.err (!%p50_p2)
}
   0x8   :  { %s54_s15 = scalar_lea.vmem %s15_s7, 256  ;;  %p59_p4 = scmp.lt.s32.totalorder %s15_s7, %s15_s7 }
   0x9   :  { %p55_p3 = scmp.ne.s32.totalorder %s15_s7, %s54_s15  ;;  %p60_p5 = scmp.lt.s32.totalorder %s54_s15, %s54_s15 }
   0xb   :  { %p61_p6 = por %p60_p5, %p59_p4 }
   0xd   :  { %p62_p7 = pnand %p61_p6, %p55_p3 }
   0xf   :  { %65 = shalt.err (!%p62_p7)
}
  0x10   :  { %17 = dma.hbm_to_vmem [thread:$0]  %s128_s0, 256, %s15_s7, [#allocation3]  }
  0x11   :  { %88 = dma.done.wait [#allocation3], 256  }
  0x12   :  { %89 = vsyncadd [#allocation3], 4294967040  ;;  %s93_s18 = smov [#allocation5]   ;;  %v21_v0 = vld [vmem:[#allocation2] sm:$0xff]  ;;  %v22_v1 = vld [vmem:[#allocation2 + $0x8] sm:$0xff] }
  0x13   :  { %s33_s19 = sshll.u32 %s93_s18, 4  ;;  %v23_v2 = vmax.f32 %v21_v0, 0.0  ;;  %v24_v3 = vmax.f32 %v22_v1, 0.0  ;;  %s34_s19 = int_to_ptr.vmem [resolvable:$true] %s33_s19 }
  0x14   :  { %s66_s20 = scalar_lea.vmem %s34_s19, 256  ;;  %p71_p9 = scmp.lt.s32.totalorder %s34_s19, %s34_s19 }
  0x15   :  { %25 = vst [vmem:[#allocation5] sm:$0xff] %v23_v2  ;;  %26 = vst [vmem:[#allocation5 + $0x8] sm:$0xff] %v24_v3  ;;  %p67_p8 = scmp.ne.s32.totalorder %s34_s19, %s66_s20  ;;  %p72_p10 = scmp.lt.s32.totalorder %s66_s20, %s66_s20 }
  0x17   :  { %p73_p11 = por %p72_p10, %p71_p9 }
  0x19   :  { %p74_p12 = pnand %p73_p11, %p67_p8 }
  0x1b   :  { %77 = shalt.err (!%p74_p12)
}
  0x1c   :  { %s78_s22 = scalar_lea.hbm %s129_s1, 256 }
  0x1d   :  { %p79_p13 = scmp.ne.s32.totalorder %s129_s1, %s78_s22  ;;  %p82_p0 = scmp.lt.u32.totalorder %s78_s22, %s129_s1 }
  0x1f   :  { %p84_p1 = pnand %p82_p0, %p79_p13 }
  0x21   :  { %87 = shalt.err (!%p84_p1)
}
  0x22   :  { %36 = dma.vmem_to_hbm [thread:$0]  %s34_s19, 256, %s129_s1, [#allocation4]  }
  0x23   :  { %90 = dma.done.wait [#allocation4], 256  }
  0x24   :  { %91 = vsyncadd [#allocation4], 4294967040 }
  0x25   :  { %40 = vsyncpa [#allocation3], 1 }
  0x26   :  { %41 = vsyncpa [#allocation4], 1 }

</bundles_post_ra>
